<compile_context>
chip_gen: v5e
topology: v5e:2x2
jax: 0.10.0
libtpu: 0.0.40
codegen_flags: <defaults>
</compile_context>

<pallas_src>
import numpy as np
import jax
import jax.numpy as jnp
from jax import lax
from jax.experimental import pallas as pl
from jax.experimental.pallas import tpu as pltpu

NUM_ATOM_TYPES = 11


def _typed_coords_kernel(natoms_ref, strict_ref, types_ref, coords_ref, out_ref, stats_ref):
    """One grid step processes Bb batch elements.

    Block shapes:
      natoms_ref : (Bp,)      int32, SMEM (whole array)
      strict_ref : (A, A)     bf16   -- strict lower-triangular ones, resident across steps
      types_ref  : (Bb, 1, A) int32  -- atom type per atom, atoms on lanes
      coords_ref : (Bb, 3, A) f32    -- xyz on sublanes, atoms on lanes (lane-dense)
      out_ref    : (Bb, 3, A) f32
      stats_ref  : (Bb, T, 2) int32  -- [:, :, 0] = counts, [:, :, 1] = offsets
    """
    gb = pl.program_id(0)
    Bb = types_ref.shape[0]
    A = types_ref.shape[2]
    T = NUM_ATOM_TYPES

    # Batch-independent index tensors, computed ONCE per grid step (outside the loop;
    # JAX does not CSE broadcast_in_dim).
    dest_iota = lax.broadcasted_iota(jnp.int32, (A, A), 0)   # output slot d on sublanes
    atom_iota = lax.broadcasted_iota(jnp.int32, (1, A), 1)   # atom index on lanes
    type_iota = lax.broadcasted_iota(jnp.int32, (T, 1), 0)   # type id on sublanes
    two_iota = lax.broadcasted_iota(jnp.int32, (T, 2), 1)    # counts/offsets selector

    def body(lb, carry):
        n = natoms_ref[gb * Bb + lb]                          # scalar int32 from SMEM
        types = types_ref[lb]                                 # (1, A)
        valid = atom_iota < n                                 # (1, A) bool

        # Per-type masks: types on sublanes (T=11), atoms on lanes.
        onehot = (types == type_iota) & valid                 # (T, A)
        less = (types < type_iota) & valid                    # (T, A): type_i < t
        onehot_i = onehot.astype(jnp.int32)
        counts_col = jnp.sum(onehot_i, axis=1, keepdims=True)                  # (T, 1)
        offsets_col = jnp.sum(less.astype(jnp.int32), axis=1, keepdims=True)   # (T, 1)

        # Within-type exclusive rank via one bf16 MXU matmul (0/1 inputs -> exact, f32 acc):
        #   excl[t, i] = #{ j < i : type_j == t and j valid }
        onehot_bf = onehot.astype(jnp.bfloat16)
        excl = jnp.dot(onehot_bf, strict_ref[...],
                       preferred_element_type=jnp.float32)                     # (T, A)
        rank = jnp.sum(jnp.where(onehot, excl, 0.0), axis=0, keepdims=True)    # (1, A)
        base = jnp.sum(onehot_i * offsets_col, axis=0, keepdims=True)          # (1, A)
        dest = base + rank.astype(jnp.int32)                                   # (1, A)

        # Transposed permutation: P_T[d, i] = 1 iff valid atom i goes to output slot d.
        perm_t = ((dest_iota == dest) & valid).astype(jnp.float32)             # (A, A)

        # Re-order coordinates on the MXU: out[c, d] = sum_i coords[c, i] * P_T[d, i].
        # HIGHEST precision -> exact f32 reproduction of the gathered coordinates.
        coords = coords_ref[lb]                                                # (3, A) f32
        out = lax.dot_general(coords, perm_t,
                              dimension_numbers=(((1,), (1,)), ((), ())),
                              preferred_element_type=jnp.float32,
                              precision=lax.Precision.HIGHEST)                 # (3, A)
        out_ref[lb] = out.astype(out_ref.dtype)

        # Merged stats writeback: column 0 = counts, column 1 = offsets.
        stats_ref[lb] = jnp.where(two_iota == 0, counts_col, offsets_col)      # (T, 2)
        return carry

    lax.fori_loop(0, Bb, body, 0)


def coords2typed_coords(coords_flat, resnames, atomnames, num_atoms, *, batch_block=8):
    """coords_flat: (B, 3*A), resnames/atomnames: (B, A) int32, num_atoms: (B,) int32."""
    B, threeA = coords_flat.shape
    A = threeA // 3
    T = NUM_ATOM_TYPES

    # TODO(synk): stand-in deterministic hash for the C++ string->type lookup table.
    atom_types = ((resnames.astype(jnp.int32) * 3
                   + atomnames.astype(jnp.int32) * 7) % T).astype(jnp.int32)   # (B, A)

    # Lane-dense layout: (B, 3, A) -- atoms on lanes, xyz on sublanes.
    # TODO(synk): if callers can provide/accept this lane-major layout directly, these
    #             wrapper transposes (two extra HBM passes over coords) can be dropped.
    coords = coords_flat.reshape(B, A, 3).astype(jnp.float32)
    coords = jnp.transpose(coords, (0, 2, 1))                                  # (B, 3, A)

    # Pad atom dim to a multiple of 128 -> lane-dense vregs and unmasked stores.
    Ap = max(128, ((A + 127) // 128) * 128)
    if Ap != A:
        coords = jnp.pad(coords, ((0, 0), (0, 0), (0, Ap - A)))
        atom_types = jnp.pad(atom_types, ((0, 0), (0, Ap - A)), constant_values=T)
    types = atom_types.reshape(B, 1, Ap)
    num_atoms = num_atoms.astype(jnp.int32)

    # Resident bf16 strict lower-triangular matrix (DMA'd once, reused every grid step).
    col = jnp.arange(Ap, dtype=jnp.int32)
    strict_lt = (col[:, None] < col[None, :]).astype(jnp.bfloat16)             # (Ap, Ap)

    # Batch blocking: Bb batch elements per grid step; keep grid >= 2 when B > 1 so the
    # "parallel" axis can be sharded over v7x's two TensorCores.
    if B > 1:
        Bb = max(1, min(batch_block, (B + 1) // 2))
    else:
        Bb = 1
    Bp = ((B + Bb - 1) // Bb) * Bb
    if Bp != B:
        pad = Bp - B
        coords = jnp.pad(coords, ((0, pad), (0, 0), (0, 0)))
        types = jnp.pad(types, ((0, pad), (0, 0), (0, 0)))
        num_atoms = jnp.pad(num_atoms, ((0, pad),))        # padded batches: n = 0 -> zeros

    out_c, stats = pl.pallas_call(
        _typed_coords_kernel,
        grid=(Bp // Bb,),
        in_specs=[
            pl.BlockSpec(memory_space=pltpu.MemorySpace.SMEM),       # num_atoms (whole, SMEM)
            pl.BlockSpec((Ap, Ap), lambda g: (0, 0)),                # strict_lt (resident)
            pl.BlockSpec((Bb, 1, Ap), lambda g: (g, 0, 0)),          # atom types
            pl.BlockSpec((Bb, 3, Ap), lambda g: (g, 0, 0)),          # coords (lane-dense)
        ],
        out_specs=[
            pl.BlockSpec((Bb, 3, Ap), lambda g: (g, 0, 0)),          # typed coords
            pl.BlockSpec((Bb, T, 2), lambda g: (g, 0, 0)),           # counts | offsets merged
        ],
        out_shape=[
            jax.ShapeDtypeStruct((Bp, 3, Ap), jnp.float32),
            jax.ShapeDtypeStruct((Bp, T, 2), jnp.int32),
        ],
        compiler_params=pltpu.CompilerParams(
            dimension_semantics=("parallel",),
            vmem_limit_bytes=64 * 1024 * 1024),
    )(num_atoms, strict_lt, types, coords)

    typed_coords = jnp.transpose(out_c[:B, :, :A], (0, 2, 1)).reshape(B, threeA)
    counts = stats[:B, :, 0]
    offsets = stats[:B, :, 1]
    return typed_coords, counts, offsets


def _reference(coords_flat, atom_types, num_atoms, T=NUM_ATOM_TYPES):
    coords_flat = np.asarray(coords_flat)
    atom_types = np.asarray(atom_types)
    num_atoms = np.asarray(num_atoms)
    B, threeA = coords_flat.shape
    A = threeA // 3
    out = np.zeros((B, threeA), np.float32)
    cnt = np.zeros((B, T), np.int32)
    off = np.zeros((B, T), np.int32)
    for b in range(B):
        n = int(num_atoms[b])
        c = coords_flat[b].reshape(A, 3)
        t = atom_types[b][:n]
        for tt in range(T):
            cnt[b, tt] = np.sum(t == tt)
        off[b] = np.concatenate([[0], np.cumsum(cnt[b])[:-1]]).astype(np.int32)
        order = np.argsort(t, kind="stable")
        out[b, : 3 * n] = c[:n][order].reshape(-1)
    return out, cnt, off


if __name__ == "__main__":
    key = jax.random.PRNGKey(0)
    B, A = 7, 32
    k1, k2, k3 = jax.random.split(key, 3)

    coords_flat = jax.random.normal(k1, (B, 3 * A), dtype=jnp.float32)
    resnames = jax.random.randint(k2, (B, A), 0, 20, dtype=jnp.int32)
    atomnames = jax.random.randint(k3, (B, A), 0, 40, dtype=jnp.int32)
    # includes n=0, n=1 and n=A edge cases; B=7 with batch_block=4 -> Bb=4, Bp=8 (padding path)
    num_atoms = jnp.array([30, 25, 32, 1, 0, 17, 8], dtype=jnp.int32)

    typed_coords, counts, offsets = coords2typed_coords(
        coords_flat, resnames, atomnames, num_atoms, batch_block=4)
    jax.block_until_ready((typed_coords, counts, offsets))

    # correctness check against a pure-numpy reference
    atom_types = np.asarray((resnames * 3 + atomnames * 7) % NUM_ATOM_TYPES)
    ref_out, ref_cnt, ref_off = _reference(coords_flat, atom_types, num_atoms)
    np.testing.assert_allclose(np.asarray(typed_coords), ref_out, rtol=1e-6, atol=1e-6)
    np.testing.assert_array_equal(np.asarray(counts), ref_cnt)
    np.testing.assert_array_equal(np.asarray(offsets), ref_off)

    print("KERNEL_OK")
</pallas_src>

<mosaic_0001>
module attributes {stable_mosaic.version = 11 : i64} {
  func.func @_typed_coords_kernel(%arg0: i32, %arg1: memref<8xi32, #tpu.memory_space<smem>>, %arg2: memref<128x128xbf16, #tpu.memory_space<vmem>>, %arg3: memref<4x1x128xi32, #tpu.memory_space<vmem>>, %arg4: memref<4x3x128xf32, #tpu.memory_space<vmem>>, %arg5: memref<4x3x128xf32, #tpu.memory_space<vmem>>, %arg6: memref<4x11x2xi32, #tpu.memory_space<vmem>>) attributes {dimension_semantics = [#tpu.dimension_semantics<parallel>], iteration_bounds = array<i64: 2>, scalar_prefetch = 0 : i64, scratch_operands = 0 : i64, tpu.core_type = #tpu.core_type<tc>, window_params = [{transform_indices = @transform_0, window_bounds = array<i64: 8>}, {pipeline_mode = #tpu.pipeline_mode<synchronous>, transform_indices = @transform_1, window_bounds = array<i64: 128, 128>}, {transform_indices = @transform_2, window_bounds = array<i64: 4, 1, 128>}, {transform_indices = @transform_3, window_bounds = array<i64: 4, 3, 128>}, {transform_indices = @transform_4, window_bounds = array<i64: 4, 3, 128>}, {transform_indices = @transform_5, window_bounds = array<i64: 4, 11, 2>}]} {
    %0 = tpu.iota {dimensions = array<i32: 0>} : vector<128x128xi32>
    %1 = tpu.iota {dimensions = array<i32: 1>} : vector<1x128xi32>
    %2 = tpu.iota {dimensions = array<i32: 0>} : vector<11x1xi32>
    %3 = tpu.iota {dimensions = array<i32: 1>} : vector<11x2xi32>
    %c0_i32 = arith.constant 0 : i32
    %c4_i32 = arith.constant 4 : i32
    %4 = arith.addi %c0_i32, %c4_i32 : i32
    %c1_i32 = arith.constant 1 : i32
    scf.for %arg7 = %c0_i32 to %4 step %c1_i32  : i32 {
      %c4_i32_1 = arith.constant 4 : i32
      %5 = arith.muli %arg0, %c4_i32_1 : i32
      %6 = arith.addi %5, %arg7 : i32
      %7 = arith.index_cast %6 : i32 to index
      %8 = memref.load %arg1[%7] : memref<8xi32, #tpu.memory_space<smem>>
      %9 = arith.index_cast %arg7 : i32 to index
      %c0 = arith.constant 0 : index
      %c0_2 = arith.constant 0 : index
      %10 = vector.load %arg3[%9, %c0, %c0_2] : memref<4x1x128xi32, #tpu.memory_space<vmem>>, vector<1x1x128xi32>
      %11 = vector.shape_cast %10 : vector<1x1x128xi32> to vector<1x128xi32>
      %12 = vector.broadcast %8 : i32 to vector<1x128xi32>
      %13 = arith.cmpi slt, %1, %12 : vector<1x128xi32>
      %14 = vector.broadcast %11 : vector<1x128xi32> to vector<11x128xi32>
      %15 = vector.broadcast %2 : vector<11x1xi32> to vector<11x128xi32>
      %16 = arith.cmpi eq, %14, %15 : vector<11x128xi32>
      %17 = vector.broadcast %13 : vector<1x128xi1> to vector<11x128xi1>
      %18 = arith.andi %16, %17 : vector<11x128xi1>
      %19 = vector.broadcast %11 : vector<1x128xi32> to vector<11x128xi32>
      %20 = vector.broadcast %2 : vector<11x1xi32> to vector<11x128xi32>
      %21 = arith.cmpi slt, %19, %20 : vector<11x128xi32>
      %22 = vector.broadcast %13 : vector<1x128xi1> to vector<11x128xi1>
      %23 = arith.andi %21, %22 : vector<11x128xi1>
      %24 = arith.extui %18 : vector<11x128xi1> to vector<11x128xi32>
      %cst = arith.constant dense<0> : vector<11xi32>
      %25 = vector.multi_reduction <add>, %24, %cst [1] : vector<11x128xi32> to vector<11xi32>
      %26 = vector.shape_cast %25 : vector<11xi32> to vector<11x1xi32>
      %27 = arith.extui %23 : vector<11x128xi1> to vector<11x128xi32>
      %cst_3 = arith.constant dense<0> : vector<11xi32>
      %28 = vector.multi_reduction <add>, %27, %cst_3 [1] : vector<11x128xi32> to vector<11xi32>
      %29 = vector.shape_cast %28 : vector<11xi32> to vector<11x1xi32>
      %30 = arith.extui %18 : vector<11x128xi1> to vector<11x128xi32>
      %31 = arith.sitofp %30 : vector<11x128xi32> to vector<11x128xf32>
      %32 = arith.truncf %31 : vector<11x128xf32> to vector<11x128xbf16>
      %c0_4 = arith.constant 0 : index
      %c0_5 = arith.constant 0 : index
      %33 = vector.load %arg2[%c0_4, %c0_5] : memref<128x128xbf16, #tpu.memory_space<vmem>>, vector<128x128xbf16>
      %cst_6 = arith.constant dense<0.000000e+00> : vector<11x128xf32>
      %34 = tpu.matmul %32, %33, %cst_6 {dimension_numbers = #tpu.dot_dimension_numbers<[1], [0], [0], [1], [0, 0, 1, 1], [], []>} : vector<11x128xbf16>, vector<128x128xbf16>, vector<11x128xf32> -> vector<11x128xf32>
      %cst_7 = arith.constant 0.000000e+00 : f32
      %35 = vector.broadcast %cst_7 : f32 to vector<11x128xf32>
      %36 = arith.select %18, %34, %35 : vector<11x128xi1>, vector<11x128xf32>
      %cst_8 = arith.constant dense<0.000000e+00> : vector<128xf32>
      %37 = vector.multi_reduction <add>, %36, %cst_8 [0] : vector<11x128xf32> to vector<128xf32>
      %38 = vector.shape_cast %37 : vector<128xf32> to vector<1x128xf32>
      %39 = vector.broadcast %29 : vector<11x1xi32> to vector<11x128xi32>
      %40 = arith.muli %24, %39 : vector<11x128xi32>
      %cst_9 = arith.constant dense<0> : vector<128xi32>
      %41 = vector.multi_reduction <add>, %40, %cst_9 [0] : vector<11x128xi32> to vector<128xi32>
      %42 = vector.shape_cast %41 : vector<128xi32> to vector<1x128xi32>
      %43 = arith.fptosi %38 : vector<1x128xf32> to vector<1x128xi32>
      %44 = arith.addi %42, %43 : vector<1x128xi32>
      %45 = vector.broadcast %44 : vector<1x128xi32> to vector<128x128xi32>
      %46 = arith.cmpi eq, %0, %45 : vector<128x128xi32>
      %47 = vector.broadcast %13 : vector<1x128xi1> to vector<128x128xi1>
      %48 = arith.andi %46, %47 : vector<128x128xi1>
      %49 = arith.extui %48 : vector<128x128xi1> to vector<128x128xi32>
      %50 = arith.sitofp %49 : vector<128x128xi32> to vector<128x128xf32>
      %51 = arith.index_cast %arg7 : i32 to index
      %c0_10 = arith.constant 0 : index
      %c0_11 = arith.constant 0 : index
      %52 = vector.load %arg4[%51, %c0_10, %c0_11] : memref<4x3x128xf32, #tpu.memory_space<vmem>>, vector<1x3x128xf32>
      %53 = vector.shape_cast %52 : vector<1x3x128xf32> to vector<3x128xf32>
      %cst_12 = arith.constant dense<0.000000e+00> : vector<3x128xf32>
      %54 = tpu.matmul %53, %50, %cst_12 {dimension_numbers = #tpu.dot_dimension_numbers<[1], [1], [0], [0], [0, 0, 1, 0], [], []>, precision = #tpu.contract_precision<fp32>} : vector<3x128xf32>, vector<128x128xf32>, vector<3x128xf32> -> vector<3x128xf32>
      %55 = arith.index_cast %arg7 : i32 to index
      %c0_13 = arith.constant 0 : index
      %c0_14 = arith.constant 0 : index
      %56 = vector.load %arg5[%55, %c0_13, %c0_14] : memref<4x3x128xf32, #tpu.memory_space<vmem>>, vector<1x3x128xf32>
      %57 = vector.shape_cast %56 : vector<1x3x128xf32> to vector<3x128xf32>
      %58 = vector.shape_cast %54 : vector<3x128xf32> to vector<1x3x128xf32>
      tpu.vector_store %arg5[%55, %c0_13, %c0_14], %58 {strides = array<i32>} : memref<4x3x128xf32, #tpu.memory_space<vmem>>, vector<1x3x128xf32>,
      %c0_i32_15 = arith.constant 0 : i32
      %59 = vector.broadcast %c0_i32_15 : i32 to vector<11x2xi32>
      %60 = arith.cmpi eq, %3, %59 : vector<11x2xi32>
      %61 = vector.shape_cast %26 : vector<11x1xi32> to vector<11x1xi32>
      %62 = vector.broadcast %61 : vector<11x1xi32> to vector<11x2xi32>
      %63 = vector.shape_cast %29 : vector<11x1xi32> to vector<11x1xi32>
      %64 = vector.broadcast %63 : vector<11x1xi32> to vector<11x2xi32>
      %65 = arith.select %60, %62, %64 : vector<11x2xi1>, vector<11x2xi32>
      %66 = arith.index_cast %arg7 : i32 to index
      %c0_16 = arith.constant 0 : index
      %c0_17 = arith.constant 0 : index
      %67 = vector.load %arg6[%66, %c0_16, %c0_17] : memref<4x11x2xi32, #tpu.memory_space<vmem>>, vector<1x11x2xi32>
      %68 = vector.shape_cast %67 : vector<1x11x2xi32> to vector<11x2xi32>
      %69 = vector.shape_cast %65 : vector<11x2xi32> to vector<1x11x2xi32>
      tpu.vector_store %arg6[%66, %c0_16, %c0_17], %69 {strides = array<i32>} : memref<4x11x2xi32, #tpu.memory_space<vmem>>, vector<1x11x2xi32>,
    }
    %c4_i32_0 = arith.constant 4 : i32
    return
  }
  func.func @transform_0(%arg0: i32) -> i32 {
    %c0_i32 = arith.constant 0 : i32
    %c0_i32_0 = arith.constant 0 : i32
    return %c0_i32 : i32
  }
  func.func @transform_1(%arg0: i32) -> (i32, i32) {
    %c0_i32 = arith.constant 0 : i32
    %c0_i32_0 = arith.constant 0 : i32
    %c0_i32_1 = arith.constant 0 : i32
    return %c0_i32, %c0_i32_0 : i32, i32
  }
  func.func @transform_2(%arg0: i32) -> (i32, i32, i32) {
    %c0_i32 = arith.constant 0 : i32
    %c0_i32_0 = arith.constant 0 : i32
    %c0_i32_1 = arith.constant 0 : i32
    return %arg0, %c0_i32, %c0_i32_0 : i32, i32, i32
  }
  func.func @transform_3(%arg0: i32) -> (i32, i32, i32) {
    %c0_i32 = arith.constant 0 : i32
    %c0_i32_0 = arith.constant 0 : i32
    %c0_i32_1 = arith.constant 0 : i32
    return %arg0, %c0_i32, %c0_i32_0 : i32, i32, i32
  }
  func.func @transform_4(%arg0: i32) -> (i32, i32, i32) {
    %c0_i32 = arith.constant 0 : i32
    %c0_i32_0 = arith.constant 0 : i32
    %c0_i32_1 = arith.constant 0 : i32
    return %arg0, %c0_i32, %c0_i32_0 : i32, i32, i32
  }
  func.func @transform_5(%arg0: i32) -> (i32, i32, i32) {
    %c0_i32 = arith.constant 0 : i32
    %c0_i32_0 = arith.constant 0 : i32
    %c0_i32_1 = arith.constant 0 : i32
    return %arg0, %c0_i32, %c0_i32_0 : i32, i32, i32
  }
}

</mosaic_0001>

<bundles_post_ra>
// kernel: tpu_custom_call.1
= control target key start
LH: loop header
LB: loop body
LE: loop exit
PB: predicated region body
PF: predicated region fallthrough
CT: control target
= control target key end

     0   :  { %11 = vsyncpa [#allocation4], 0  ;;  %s1978_s0 = inlined_call_operand.vmem [shape: s32[8], index: 0, kind: input, shape index: {}]   ;;  %s1979_s1 = inlined_call_operand.hbm [shape: bf16[128,128], index: 1, kind: input, shape index: {}]   ;;  %s1980_s2 = inlined_call_operand.vmem [shape: s32[8,1,128], index: 2, kind: input, shape index: {}]   ;;  %s1981_s3 = inlined_call_operand.vmem [shape: f32[8,3,128], index: 3, kind: input, shape index: {}]   ;;  %s1982_s4 = inlined_call_operand.vmem [shape: f32[8,3,128], index: 4, kind: output, shape index: {0}]   ;;  %s1983_s5 = inlined_call_operand.vmem [shape: s32[8,11,2], index: 5, kind: output, shape index: {1}]  }
   0x1   :  { %12 = vsyncpa [#allocation3], 0  ;;  %s1338_s18 = smov 0  }
   0x2 LB: > { %s181_s21 = sshll.u32 %s1978_s0, 4  ;;  %s1051_s22 = sadd.s32 4294967295, %s1294_s18   ;;  %s1294_s18 = sphi %s1338_s18, %s18_s18   ;;  %s182_s21 = int_to_ptr.vmem [resolvable:$true] %s181_s21 }
   0x3   : > { %p1053_p0 = scmp.ge.s32.totalorder %s1294_s18, 1  ;;  %p169_p1 = scmp.lt.s32.totalorder %s1294_s18, 3 }
   0x4   : > { %p1349_p2 = scmp.eq.s32.totalorder %s1051_s22, 0  ;;  %s190_s27 = sshll.u32 %s1979_s1, 4  ;;  %s191_s27 = int_to_ptr.hbm [resolvable:$true] %s190_s27 }
   0x5   : > { %p1353_p3 = pnand %p1053_p0, %p169_p1  ;;  %s1300_s28 = smov [#allocation5]  }
   0x6   : > { %s192_s29 = sshll.u32 %s1300_s28, 4  ;;  %s1301_s30 = smov [#allocation2]   ;;  %s193_s29 = int_to_ptr.vmem [resolvable:$true] %s192_s29 }
   0x7   : > { %p1195_p4 = pneg %p1353_p3  ;;  %s1302_s6 = smov 64  }
   0x8   : > { %s1303_s7 = smov 4   ;;  %225 = sbr.rel (%p1353_p3) target bundleno = 489 (0x1e9), region = 36 }
   0x9   : > { %p1196_p5 = pnand %p1349_p2, %p1195_p4 }
   0xb   : > { %1198 = dma.vmem_to_smem (!%p1196_p5), %s182_s21, 16, %s1301_s30, [#allocation4]  }
   0xc   : > { %1201 = dma.hbm_to_vmem [thread:$0]  (!%p1196_p5), %s191_s27, 1024, %s193_s29, [#allocation3], %s1302_s6, %s1302_s6, %s1303_s7  }
   0xd   : > { %1285 = dma.done.wait (%p1349_p2), [#allocation4], 16  }
   0xe   : > { %1287 = vsyncadd (%p1349_p2), [#allocation4], 4294967280 }
   0xf   : > { %1289 = dma.done.wait (%p1349_p2), [#allocation3], 1024  }
  0x10   : > { %1291 = vsyncadd (%p1349_p2), [#allocation3], 4294966272 }
  0x11   : > { %237 = sfence }
  0x12   : > { %s1374_s8 = sshll.u32 %s1051_s22, 2  ;;  %v294_v0 = vlaneseq  ;;  %s1450_s25 = smov 0  }
  0x13   : > { %p271_p6 = scmp.lt.s32.totalorder %s1374_s8, 7 }
  0x14   : > { %v1377_v1 = vshrl.u32 %v294_v0, 7  ;;  %v1379_v2 = vand.u32 127, %v294_v0 }
  0x15   : > { %s1382_s9 = scalar_select %p271_p6, %s1374_s8, 7 }
  0x16   : > { %v1385_v3 = vadd.s32 8, %v1377_v1  ;;  %v1388_v4 = vadd.s32 16, %v1377_v1  ;;  %v1391_v5 = vadd.s32 24, %v1377_v1  ;;  %v1394_v6 = vadd.s32 32, %v1377_v1 }
  0x17   : > { %s273_s12 = scalar_lea.vmem %s1980_s2, %s1382_s9  ;;  %s1062_s13 = sshll.u32 %s1382_s9, 2  ;;  %v1402_v7 = vadd.s32 40, %v1377_v1  ;;  %v1405_v8 = vadd.s32 48, %v1377_v1  ;;  %v1408_v9 = vadd.s32 56, %v1377_v1  ;;  %v1411_v10 = vadd.s32 64, %v1377_v1 }
  0x18   : > { %s1416_s16 = scalar_lea.vmem %s1981_s3, %s1062_s13  ;;  %s1421_s20 = scalar_lea.vmem %s1982_s4, %s1062_s13  ;;  %v1424_v11 = vadd.s32 72, %v1377_v1  ;;  %v1427_v12 = vadd.s32 80, %v1377_v1  ;;  %v1430_v13 = vadd.s32 88, %v1377_v1  ;;  %v1433_v14 = vadd.s32 96, %v1377_v1 }
  0x19   : > { %s1173_s21 = sshll.u32 %s1382_s9, 4  ;;  %v1437_v15 = vadd.s32 104, %v1377_v1  ;;  %v1440_v16 = vadd.s32 112, %v1377_v1  ;;  %v1443_v17 = vadd.s32 120, %v1377_v1 }
  0x1a   : > { %s1448_s24 = scalar_lea.vmem %s1983_s5, %s1173_s21 }
  0x1b LB: >> { %v1181_v18 = vld [vmem:[#allocation5 + $0x38] sm:$0xff]  ;;  %v1180_v19 = vld [vmem:[#allocation5 + $0x30] sm:$0xff]  ;;  %s320_s26 = sadd.s32 %s1298_s25, %s1374_s8  ;;  %s322_s29 = scalar_lea.vmem %s273_s12, %s1298_s25  ;;  %v1179_v21 = vld [vmem:[#allocation5 + $0x28] sm:$0xff]  ;;  %vm351_vm3 = vcmask 1042432   ;;  %v1304_v25 = vmov 0   ;;  %vm905_vm11 = vcmp.eq.s32.totalorder %v1379_v2, 0  ;;  %s1298_s25 = sphi %s1450_s25, %s318_s25  }
  0x1c   : >> { %459 = vmatpush.bf16.msra.mxu0 %v1181_v18  ;;  %s321_s30 = sld [smem:[#allocation2 + %s320_s26]]  ;;  %v1230_v20 = vld [vmem:[%s322_s29] ss:$0 sm:$0xff]  ;;  %v1177_v31 = vld [vmem:[#allocation5 + $0x18] sm:$0xff]  ;;  %v1176_v41 = vld [vmem:[#allocation5 + $0x10] sm:$0xff]  ;;  %s1170_s6 = sshll.u32 %s1298_s25, 4 }
  0x1d   : >> { %vm334_vm0 = vcmp.lt.s32.totalorder %v1230_v20, %v1385_v3  ;;  %vm327_vm1 = vcmp.eq.s32.totalorder %v1230_v20, %v1377_v1  ;;  %v1178_v23 = vld [vmem:[#allocation5 + $0x20] sm:$0xff]  ;;  %vm328_vm4 = vcmp.eq.s32.totalorder %v1230_v20, %v1385_v3  ;;  %vm333_vm7 = vcmp.lt.s32.totalorder %v1230_v20, %v1377_v1  ;;  %v1175_v45 = vld [vmem:[#allocation5 + $0x8] sm:$0xff]  ;;  %s909_s7 = scalar_lea.vmem %s1448_s24, %s1170_s6  ;;  %s1121_s10 = sshll.u32 %s1298_s25, 2 }
  0x1e   : >> { %v1174_v49 = vld [vmem:[#allocation5] sm:$0xff]  ;;  %v1305_v54 = vmov 1.0|1.0   ;;  %vm912_vm12 = vcmask 10240   ;;  %vm910_vm13 = vcmask 15360   ;;  %s560_s11 = scalar_lea.vmem %s1416_s16, %s1121_s10  ;;  %s903_s13 = scalar_lea.vmem %s1421_s20, %s1121_s10 }
  0x1f   : >> { %s318_s25 = sadd.s32 1, %s1298_s25  }
  0x20   : >> { %460 = vmatpush.bf16.msra.mxu0 %v1180_v19  ;;  %p315_p7 = scmp.ge.s32.totalorder %s318_s25, 4  }
  0x22   : >> { %v324_v22 = vstv %s321_s30 }
  0x23   : >> { %vm1466_vm2 = vcmp.lt.s32.totalorder %v1379_v2, %v324_v22 }
  0x24   : >> { %461 = vmatpush.bf16.msra.mxu0 %v1179_v21  ;;  %vm336_vm5 = vmand %vm334_vm0, %vm1466_vm2 }
  0x25   : >> { %v366_v26 = vsel %vm336_vm5, 1, %v1304_v25  ;;  %vm1475_vm6 = vmand %vm327_vm1, %vm1466_vm2 }
  0x26   : >> { %v379_v28 = vsel %vm351_vm3, %v366_v26, 0  ;;  %vm1483_vm8 = vmand %vm328_vm4, %vm1466_vm2  ;;  %v1489_v30 = vsel %vm1475_vm6, 1, %v1304_v25 }
  0x27   : >> { %v380_v32 = vand.u32 65535, %v379_v28  ;;  %v381_v33 = vshrl.u32 %v379_v28, 16  ;;  %v340_v34 = vshrl.u32 %v1489_v30, 16  ;;  %v1494_v35 = vsel %vm1483_vm8, 1, %v1304_v25  ;;  %vm335_vm9 = vmand %vm333_vm7, %vm1466_vm2 }
  0x28   : >> { %462 = vmatpush.bf16.msra.mxu0 %v1178_v23  ;;  %v352_v36 = vsel %vm351_vm3, %v1494_v35, 0  ;;  %v365_v40 = vsel %vm335_vm9, 1, %v1304_v25  ;;  %v339_v51 = vand.u32 65535, %v1489_v30  ;;  %vm1103_vm10 = vmpackc.low %vm1483_vm8, %vm1475_vm6 }
  0x29   : >> { %v382_v37 = vcvt.s32.f32 %v380_v32  ;;  %v383_v38 = vcvt.s32.f32 %v381_v33  ;;  %v342_v39 = vcvt.s32.f32 %v340_v34  ;;  %v367_v42 = vand.u32 65535, %v365_v40 }
  0x2a   : >> { %v368_v43 = vshrl.u32 %v365_v40, 16  ;;  %v354_v44 = vshrl.u32 %v352_v36, 16  ;;  %v353_v50 = vand.u32 65535, %v352_v36  ;;  %v341_v53 = vcvt.s32.f32 %v339_v51 }
  0x2b   : >> { %384 = vadd.xlane.f32.xlu1 %v382_v37  ;;  %386 = vadd.xlane.f32.xlu0 %v383_v38  ;;  %v369_v46 = vcvt.s32.f32 %v367_v42 }
  0x2c   : >> { %463 = vmatpush.bf16.msra.mxu0 %v1177_v31  ;;  %345 = vadd.xlane.f32.xlu2 %v342_v39  ;;  %v370_v47 = vcvt.s32.f32 %v368_v43  ;;  %v356_v48 = vcvt.s32.f32 %v354_v44  ;;  %v355_v52 = vcvt.s32.f32 %v353_v50 }
  0x30   : >> { %464 = vmatpush.bf16.msra.mxu0 %v1176_v41 }
  0x33   : >> { %371 = vadd.xlane.f32.xlu1 %v369_v46  ;;  %373 = vadd.xlane.f32.xlu0 %v370_v47 }
  0x34   : >> { %465 = vmatpush.bf16.msra.mxu0 %v1175_v45  ;;  %359 = vadd.xlane.f32.xlu2 %v356_v48 }
  0x38   : >> { %466 = vmatpush.bf16.msra.mxu0 %v1174_v49 }
  0x3b   : >> { %1104 = vmatmul.msk.bf16.vlgmr.msra.gmra.mxu0 %vm1103_vm10, %v1305_v54  ;;  %357 = vadd.xlane.f32.xlu1 %v355_v52 }
  0x3c   : >> { %343 = vadd.xlane.f32.xlu0 %v341_v53 }
  0x9e   : >> { %v385_v55 = vpop.xlane.xlu1 %384  ;;  %v387_v56 = vpop.xlane.xlu0 %386 }
  0x9f   : >> { %v346_v57 = vpop.xlane.xlu2 %345  ;;  %v389_v61 = vcvt.f32.s32 %v387_v56  ;;  %v388_v18 = vcvt.f32.s32 %v385_v55 }
  0xa0   : >> { %v348_v63 = vcvt.f32.s32 %v346_v57 }
  0xa1   : >> { %v390_v19 = vshll.u32 %v389_v61, 16 }
  0xa2   : >> { %v349_v21 = vshll.u32 %v348_v63, 16  ;;  %v1306_v63 = vmov 1.0  }
  0xa3   : >> { %v391_v31 = vadd.s32 %v390_v19, %v388_v18 }
  0xa5   : >> { %v484_v38 = vmul.u32 %v391_v31, %v1494_v35 }
  0xa6   : >> { %v372_v58 = vpop.xlane.xlu1 %371  ;;  %v374_v59 = vpop.xlane.xlu0 %373 }
  0xa7   : >> { %v360_v60 = vpop.xlane.xlu2 %359  ;;  %v376_v0 = vcvt.f32.s32 %v374_v59  ;;  %v375_v22 = vcvt.f32.s32 %v372_v58  ;;  %v485_v42 = vsel %vm351_vm3, %v484_v38, 0 }
  0xa8   : >> { %v362_v62 = vcvt.f32.s32 %v360_v60 }
  0xa9   : >> { %v377_v23 = vshll.u32 %v376_v0, 16  ;;  %v1307_v0 = vmov 0.0  }
  0xaa   : >> { %v363_v20 = vshll.u32 %v362_v62, 16 }
  0xab   : >> { %v378_v34 = vadd.s32 %v377_v23, %v375_v22 }
  0xad   : >> { %v483_v40 = vmul.u32 %v378_v34, %v1489_v30 }
  0xae   : >> { %v358_v25 = vpop.xlane.xlu1 %357 }
  0xaf   : >> { %v361_v26 = vcvt.f32.s32 %v358_v25  ;;  %v344_v28 = vpop.xlane.xlu0 %343  ;;  %v486_v43 = vadd.s32 %v485_v42, %v483_v40 }
  0xb0   : >> { %v347_v32 = vcvt.f32.s32 %v344_v28 }
  0xb1   : >> { %v364_v33 = vadd.s32 %v363_v20, %v361_v26  ;;  %v487_v44 = vrot.slane %v486_v43, 4 }
  0xb2   : >> { %v350_v36 = vadd.s32 %v349_v21, %v347_v32 }
  0xb3   : >> { %v907_v37 = vsel %vm905_vm11, %v364_v33, %v391_v31  ;;  %v488_v49 = vadd.s32 %v487_v44, %v486_v43 }
  0xb4   : >> { %913 = vst.msk [vmem:[%s909_s7 + $0x8] sm:$0x7] %vm912_vm12, %v907_v37  ;;  %v906_v39 = vsel %vm905_vm11, %v350_v36, %v378_v34 }
  0xb5   : >> { %911 = vst.msk [vmem:[%s909_s7] sm:$0xff] %vm910_vm13, %v906_v39  ;;  %v489_v52 = vrot.slane %v488_v49, 2 }
  0xb7   : >> { %v490_v54 = vadd.s32 %v489_v52, %v488_v49 }
  0xb8   : >> { %v468_v41 = vpop.f32.mrf.mxu0 }
  0xb9   : >> { %v473_v47 = vsel %vm1475_vm6, %v468_v41, 0.0  ;;  %v491_v57 = vrot.slane %v490_v54, 1 }
  0xbb   : >> { %v492_v60 = vadd.s32 %v491_v57, %v490_v54 }
  0xc0   : >> { %v470_v45 = vpop.f32.mrf.mxu0 }
  0xc1   : >> { %v474_v46 = vsel %vm1483_vm8, %v470_v45, 0.0 }
  0xc2   : >> { %v475_v48 = vsel %vm351_vm3, %v474_v46, 0.0 }
  0xc3   : >> { %v476_v35 = vadd.f32 %v475_v48, %v473_v47 }
  0xc5   : >> { %v477_v50 = vrot.slane %v476_v35, 4 }
  0xc7   : >> { %v478_v51 = vadd.f32 %v477_v50, %v476_v35 }
  0xc9   : >> { %v479_v30 = vrot.slane %v478_v51, 2 }
  0xcb   : >> { %v480_v53 = vadd.f32 %v479_v30, %v478_v51 }
  0xcd   : >> { %v481_v55 = vrot.slane %v480_v53, 1 }
  0xcf   : >> { %v482_v56 = vadd.f32 %v481_v55, %v480_v53 }
  0xd1   : >> { %vm1182_vm14 = vcmp.lt.s32.totalorder %v482_v56, 0  ;;  %v1183_v58 = vceil.f32 %v482_v56  ;;  %v1184_v29 = vfloor.f32 %v482_v56 }
  0xd3   : >> { %v1185_v59 = vsel %vm1182_vm14, %v1183_v58, %v1184_v29 }
  0xd4   : >> { %v1186_v27 = vcvt.f32.s32 %v1185_v59 }
  0xd6   : >> { %v1516_v61 = vadd.s32 %v1186_v27, %v492_v60 }
  0xd8   : >> { %vm510_vm15 = vcmp.eq.s32.totalorder %v1443_v17, %v1516_v61  ;;  %vm509_vm0 = vcmp.eq.s32.totalorder %v1440_v16, %v1516_v61  ;;  %vm508_vm1 = vcmp.eq.s32.totalorder %v1437_v15, %v1516_v61  ;;  %vm507_vm4 = vcmp.eq.s32.totalorder %v1433_v14, %v1516_v61 }
  0xd9   : >> { %vm1526_vm3 = vmand %vm510_vm15, %vm1466_vm2  ;;  %vm506_vm8 = vcmp.eq.s32.totalorder %v1430_v13, %v1516_v61  ;;  %vm505_vm10 = vcmp.eq.s32.totalorder %v1427_v12, %v1516_v61  ;;  %vm504_vm12 = vcmp.eq.s32.totalorder %v1424_v11, %v1516_v61  ;;  %vm503_vm14 = vcmp.eq.s32.totalorder %v1411_v10, %v1516_v61 }
  0xda   : >> { %1122 = vmatpush.xpose.msk.msra.mxu1 %vm1526_vm3, %v1306_v63  ;;  %1138 = vmatpush.xpose.msk.msrb.mxu0 %vm1526_vm3, %v1306_v63  ;;  %v1120_v18 = vsel %vm1526_vm3, 1.0, %v1307_v0  ;;  %vm1543_vm5 = vmand %vm509_vm0, %vm1466_vm2  ;;  %vm502_vm0 = vcmp.eq.s32.totalorder %v1408_v9, %v1516_v61 }
  0xdb   : >> { %v1547_v20 = vsub.f32 %v1120_v18, %v1120_v18  ;;  %v1119_v21 = vsel %vm1543_vm5, 1.0, %v1307_v0  ;;  %vm1554_vm6 = vmand %vm508_vm1, %vm1466_vm2 }
  0xdc   : >> { %v1558_v23 = vsub.f32 %v1119_v21, %v1119_v21  ;;  %v1118_v25 = vsel %vm1554_vm6, 1.0, %v1307_v0  ;;  %vm1565_vm7 = vmand %vm507_vm4, %vm1466_vm2  ;;  %vm501_vm4 = vcmp.eq.s32.totalorder %v1405_v8, %v1516_v61  ;;  %v2019_v21 = vmov 0 }
  0xdd   : >> { %706 = vmatpush.xpose.msra.mxu3 %v1547_v20  ;;  %v605_v28 = vand.u32 4294901760, %v1547_v20  ;;  %v1573_v31 = vsub.f32 %v1118_v25, %v1118_v25  ;;  %v1117_v33 = vsel %vm1565_vm7, 1.0, %v1307_v0  ;;  %vm1590_vm9 = vmand %vm506_vm8, %vm1466_vm2 }
  0xde   : >> { %1123 = vmatpush.xpose.msk.msra.mxu1 %vm1543_vm5, %v1306_v63  ;;  %1139 = vmatpush.xpose.msk.msrb.mxu0 %vm1543_vm5, %v1306_v63  ;;  %v611_v32 = vand.u32 4294901760, %v1558_v23  ;;  %v1600_v39 = vsub.f32 %v1117_v33, %v1117_v33  ;;  %v1116_v41 = vsel %vm1590_vm9, 1.0, %v1307_v0  ;;  %vm1614_vm11 = vmand %vm505_vm10, %vm1466_vm2  ;;  %vm500_vm10 = vcmp.eq.s32.totalorder %v1402_v7, %v1516_v61 }
  0xdf   : >> { %v606_v34 = vsub.f32 %v1547_v20, %v605_v28  ;;  %v617_v40 = vand.u32 4294901760, %v1573_v31  ;;  %v1624_v45 = vsub.f32 %v1116_v41, %v1116_v41  ;;  %v1115_v47 = vsel %vm1614_vm11, 1.0, %v1307_v0  ;;  %vm1638_vm13 = vmand %vm504_vm12, %vm1466_vm2  ;;  %v561_v20 = vld [vmem:[%s560_s11] sm:$0x7] }
  0xe0   : >> { %v612_v38 = vsub.f32 %v1558_v23, %v611_v32  ;;  %v623_v46 = vand.u32 4294901760, %v1600_v39  ;;  %v1648_v50 = vsub.f32 %v1115_v47, %v1115_v47  ;;  %v1114_v52 = vsel %vm1638_vm13, 1.0, %v1307_v0  ;;  %vm1662_vm15 = vmand %vm503_vm14, %vm1466_vm2 }
  0xe1   : >> { %709 = vmatpush.xpose.msra.mxu3 %v1558_v23  ;;  %v607_v37 = vand.u32 4294901760, %v606_v34  ;;  %v618_v44 = vsub.f32 %v1573_v31, %v617_v40  ;;  %v629_v51 = vand.u32 4294901760, %v1624_v45  ;;  %v1672_v55 = vsub.f32 %v1114_v52, %v1114_v52  ;;  %vm1686_vm1 = vmand %vm502_vm0, %vm1466_vm2 }
  0xe2   : >> { %1124 = vmatpush.xpose.msk.msra.mxu1 %vm1554_vm6, %v1306_v63  ;;  %1140 = vmatpush.xpose.msk.msrb.mxu0 %vm1554_vm6, %v1306_v63  ;;  %v613_v43 = vand.u32 4294901760, %v612_v38  ;;  %v624_v49 = vsub.f32 %v1600_v39, %v623_v46  ;;  %v635_v56 = vand.u32 4294901760, %v1648_v50  ;;  %v1113_v57 = vsel %vm1662_vm15, 1.0, %v1307_v0  ;;  %vm1710_vm8 = vmand %vm501_vm4, %vm1466_vm2 }
  0xe3   : >> { %608 = vmatpush.xpose.msra.mxu2 %v607_v37  ;;  %v619_v35 = vand.u32 4294901760, %v618_v44  ;;  %v630_v54 = vsub.f32 %v1624_v45, %v629_v51  ;;  %v1696_v60 = vsub.f32 %v1113_v57, %v1113_v57  ;;  %v1991_v27 = vand.u32 4294901760, %v1672_v55  ;;  %vm1734_vm12 = vmand %vm500_vm10, %vm1466_vm2 }
  0xe4   : >> { %v625_v53 = vand.u32 4294901760, %v624_v49  ;;  %v636_v59 = vsub.f32 %v1648_v50, %v635_v56  ;;  %v1112_v18 = vsel %vm1686_vm1, 1.0, %v1307_v0  ;;  %v2020_v21 = vsel %vm1710_vm8, 4294967295, %v2019_v21 }
  0xe5   : >> { %712 = vmatpush.xpose.msra.mxu3 %v1573_v31  ;;  %v631_v29 = vand.u32 4294901760, %v630_v54  ;;  %v642_v33 = vsub.f32 %v1672_v55, %v1991_v27  ;;  %v1720_v34 = vsub.f32 %v1112_v18, %v1112_v18  ;;  %v1990_v37 = vand.u32 4294901760, %v1696_v60 }
  0xe6   : >> { %1125 = vmatpush.xpose.msk.msra.mxu1 %vm1565_vm7, %v1306_v63  ;;  %1141 = vmatpush.xpose.msk.msrb.mxu0 %vm1565_vm7, %v1306_v63  ;;  %v637_v25 = vand.u32 4294901760, %v636_v59  ;;  %v1111_v38 = vsel %vm1710_vm8, 1.0, %v1307_v0  ;;  %v2021_v41 = vmov 0  ;;  %vm499_vm14 = vcmp.eq.s32.totalorder %v1394_v6, %v1516_v61 }
  0xe7   : >> { %614 = vmatpush.xpose.msra.mxu2 %v613_v43  ;;  %v2022_v41 = vsel %vm1734_vm12, 4294967295, %v2021_v41  ;;  %v643_v43 = vand.u32 4294901760, %v642_v33  ;;  %v648_v44 = vsub.f32 %v1696_v60, %v1990_v37  ;;  %v1744_v47 = vsub.f32 %v1111_v38, %v1111_v38  ;;  %vm1758_vm0 = vmand %vm499_vm14, %vm1466_vm2 }
  0xe8   : >> { %v1110_v49 = vsel %vm1734_vm12, 1.0, %v1307_v0  ;;  %vm498_vm4 = vcmp.eq.s32.totalorder %v1391_v5, %v1516_v61  ;;  %v1109_v59 = vsel %vm1758_vm0, 1.0, %v1307_v0  ;;  %vm497_vm14 = vcmp.eq.s32.totalorder %v1388_v4, %v1516_v61 }
  0xe9   : >> { %715 = vmatpush.xpose.msra.mxu3 %v1600_v39  ;;  %v1768_v57 = vsub.f32 %v1110_v49, %v1110_v49  ;;  %vm1782_vm10 = vmand %vm498_vm4, %vm1466_vm2  ;;  %v1792_v38 = vsub.f32 %v1109_v59, %v1109_v59  ;;  %v2033_v62 = vand.u32 4294901760, %v1672_v55  ;;  %v2034_v19 = vand.u32 4294901760, %v1696_v60 }
  0xea   : >> { %1126 = vmatpush.xpose.msk.msra.mxu1 %vm1590_vm9, %v1306_v63  ;;  %1142 = vmatpush.xpose.msk.msrb.mxu0 %vm1590_vm9, %v1306_v63  ;;  %vm1806_vm4 = vmand %vm497_vm14, %vm1466_vm2  ;;  %v594_v22 = vand.u32 4294901760, %v561_v20  ;;  %v2035_v23 = vand.u32 4294901760, %v1720_v34  ;;  %v2036_v31 = vand.u32 4294901760, %v1744_v47 }
  0xeb   : >> { %620 = vmatpush.xpose.msra.mxu2 %v619_v35  ;;  %v1988_v35 = vand.u32 4294901760, %v1720_v34  ;;  %v2037_v39 = vand.u32 4294901760, %v1768_v57 }
  0xec   : >> { %v595_v26 = vsub.f32 %v561_v20, %v594_v22 }
  0xed   : >> { %718 = vmatpush.xpose.msra.mxu3 %v1624_v45  ;;  %v654_v54 = vsub.f32 %v1720_v34, %v1988_v35 }
  0xee   : >> { %1127 = vmatpush.xpose.msk.msra.mxu1 %vm1614_vm11, %v1306_v63  ;;  %1143 = vmatpush.xpose.msk.msrb.mxu0 %vm1614_vm11, %v1306_v63 }
  0xef   : >> { %626 = vmatpush.xpose.msra.mxu2 %v625_v53  ;;  %v649_v53 = vand.u32 4294901760, %v648_v44  ;;  %v1108_v44 = vsel %vm1782_vm10, 1.0, %v1307_v0 }
  0xf0   : >> { %v1816_v59 = vsub.f32 %v1108_v44, %v1108_v44 }
  0xf1   : >> { %721 = vmatpush.xpose.msra.mxu3 %v1648_v50 }
  0xf2   : >> { %1128 = vmatpush.xpose.msk.msra.mxu1 %vm1638_vm13, %v1306_v63  ;;  %1144 = vmatpush.xpose.msk.msrb.mxu0 %vm1638_vm13, %v1306_v63  ;;  %v2040_v42 = vand.u32 4294901760, %v1816_v59 }
  0xf3   : >> { %632 = vmatpush.xpose.msra.mxu2 %v631_v29  ;;  %v1987_v29 = vand.u32 4294901760, %v1744_v47 }
  0xf5   : >> { %724 = vmatpush.xpose.msra.mxu3 %v1672_v55  ;;  %v660_v33 = vsub.f32 %v1744_v47, %v1987_v29 }
  0xf6   : >> { %1129 = vmatpush.xpose.msk.msra.mxu1 %vm1662_vm15, %v1306_v63  ;;  %1145 = vmatpush.xpose.msk.msrb.mxu0 %vm1662_vm15, %v1306_v63 }
  0xf7   : >> { %638 = vmatpush.xpose.msra.mxu2 %v637_v25  ;;  %v655_v25 = vand.u32 4294901760, %v654_v54 }
  0xf9   : >> { %727 = vmatpush.xpose.msra.mxu3 %v1696_v60 }
  0xfa   : >> { %1130 = vmatpush.xpose.msk.msra.mxu1 %vm1686_vm1, %v1306_v63  ;;  %1146 = vmatpush.xpose.msk.msrb.mxu0 %vm1686_vm1, %v1306_v63 }
  0xfb   : >> { %644 = vmatpush.xpose.msra.mxu2 %v643_v43  ;;  %v1986_v43 = vand.u32 4294901760, %v1768_v57 }
  0xfd   : >> { %730 = vmatpush.xpose.msra.mxu3 %v1720_v34  ;;  %v666_v54 = vsub.f32 %v1768_v57, %v1986_v43 }
  0xfe   : >> { %1131 = vmatpush.xpose.msk.msra.mxu1 %vm1710_vm8, %v1306_v63  ;;  %1147 = vmatpush.xpose.msk.msrb.mxu0 %vm1710_vm8, %v1306_v63  ;;  %vm496_vm8 = vcmp.eq.s32.totalorder %v1385_v3, %v1516_v61 }
  0xff   : >> { %650 = vmatpush.xpose.msra.mxu2 %v649_v53  ;;  %v661_v53 = vand.u32 4294901760, %v660_v33  ;;  %v1107_v33 = vsel %vm1806_vm4, 1.0, %v1307_v0  ;;  %vm1830_vm14 = vmand %vm496_vm8, %vm1466_vm2  ;;  %v667_v43 = vand.u32 4294901760, %v666_v54 }
 0x100   : >> { %v1840_v35 = vsub.f32 %v1107_v33, %v1107_v33 }
 0x101   : >> { %733 = vmatpush.xpose.msra.mxu3 %v1744_v47 }
 0x102   : >> { %1132 = vmatpush.xpose.msk.msra.mxu1 %vm1734_vm12, %v1306_v63  ;;  %1148 = vmatpush.xpose.msk.msrb.mxu0 %vm1734_vm12, %v1306_v63  ;;  %vm495_vm12 = vcmp.eq.s32.totalorder %v1377_v1, %v1516_v61  ;;  %v1106_v61 = vsel %vm1830_vm14, 1.0, %v1307_v0  ;;  %v683_v27 = vand.u32 4294901760, %v1840_v35 }
 0x103   : >> { %656 = vmatpush.xpose.msra.mxu2 %v655_v25  ;;  %v1989_v25 = vand.u32 4294901760, %v1792_v38  ;;  %vm1854_vm8 = vmand %vm495_vm12, %vm1466_vm2  ;;  %v1862_v37 = vsub.f32 %v1106_v61, %v1106_v61  ;;  %vm2039_vm2 = vnez %v2020_v21 }
 0x104   : >> { %v1105_v24 = vsel %vm1854_vm8, 1.0, %v1307_v0 }
 0x105   : >> { %736 = vmatpush.xpose.msra.mxu3 %v1768_v57  ;;  %v672_v29 = vsub.f32 %v1792_v38, %v1989_v25  ;;  %v694_v61 = vsub.f32 %v1105_v24, %v1105_v24 }
 0x106   : >> { %1133 = vmatpush.xpose.msk.msra.mxu1 %vm1758_vm0, %v1306_v63  ;;  %1149 = vmatpush.xpose.msk.msrb.mxu0 %vm1758_vm0, %v1306_v63 }
 0x107   : >> { %662 = vmatpush.xpose.msra.mxu2 %v661_v53  ;;  %v1992_v53 = vand.u32 4294901760, %v1816_v59  ;;  %v673_v33 = vand.u32 4294901760, %v672_v29 }
 0x109   : >> { %739 = vmatpush.xpose.msra.mxu3 %v1792_v38  ;;  %v678_v25 = vsub.f32 %v1816_v59, %v1992_v53  ;;  %v689_v53 = vand.u32 4294901760, %v1862_v37 }
 0x10a   : >> { %1134 = vmatpush.xpose.msk.msra.mxu1 %vm1782_vm10, %v1306_v63  ;;  %1150 = vmatpush.xpose.msk.msrb.mxu0 %vm1782_vm10, %v1306_v63 }
 0x10b   : >> { %668 = vmatpush.xpose.msra.mxu2 %v667_v43  ;;  %v679_v29 = vand.u32 4294901760, %v678_v25  ;;  %v684_v43 = vsub.f32 %v1840_v35, %v683_v27  ;;  %v695_v25 = vand.u32 4294901760, %v694_v61 }
 0x10d   : >> { %742 = vmatpush.xpose.msra.mxu3 %v1816_v59  ;;  %v685_v0 = vand.u32 4294901760, %v684_v43  ;;  %v696_v24 = vsub.f32 %v694_v61, %v695_v25 }
 0x10e   : >> { %1135 = vmatpush.xpose.msk.msra.mxu1 %vm1806_vm4, %v1306_v63  ;;  %1151 = vmatpush.xpose.msk.msrb.mxu0 %vm1806_vm4, %v1306_v63 }
 0x10f   : >> { %674 = vmatpush.xpose.msra.mxu2 %v673_v33  ;;  %v690_v33 = vsub.f32 %v1862_v37, %v689_v53 }
 0x111   : >> { %745 = vmatpush.xpose.msra.mxu3 %v1840_v35  ;;  %v691_v35 = vand.u32 4294901760, %v690_v33 }
 0x112   : >> { %1136 = vmatpush.xpose.msk.msra.mxu1 %vm1830_vm14, %v1306_v63  ;;  %1152 = vmatpush.xpose.msk.msrb.mxu0 %vm1830_vm14, %v1306_v63 }
 0x113   : >> { %680 = vmatpush.xpose.msra.mxu2 %v679_v29 }
 0x115   : >> { %748 = vmatpush.xpose.msra.mxu3 %v1862_v37  ;;  %v697_v37 = vand.u32 4294901760, %v696_v24 }
 0x116   : >> { %1137 = vmatpush.xpose.msk.msra.mxu1 %vm1854_vm8, %v1306_v63  ;;  %1153 = vmatpush.xpose.msk.msrb.mxu0 %vm1854_vm8, %v1306_v63 }
 0x117   : >> { %686 = vmatpush.xpose.msra.mxu2 %v685_v0 }
 0x119   : >> { %751 = vmatpush.xpose.msra.mxu3 %v694_v61 }
 0x11a   : >> { %800 = vmatpush.xpose.msrb.mxu1 %v605_v28  ;;  %v596_v28 = vand.u32 4294901760, %v595_v26 }
 0x11b   : >> { %692 = vmatpush.xpose.msra.mxu2 %v691_v35 }
 0x11c   : >> { %754 = vmatmul.f32.vlgmr.msra.gmra.mxu3 %v595_v26  ;;  %793 = vmatmul.f32.vlgmr.msrb.gmra.mxu0 %v596_v28 }
 0x11e   : >> { %804 = vmatpush.xpose.msrb.mxu1 %v611_v32  ;;  %v597_v32 = vsub.f32 %v595_v26, %v596_v28 }
 0x11f   : >> { %698 = vmatpush.xpose.msra.mxu2 %v697_v37 }
 0x120   : >> { %v598_v36 = vand.u32 4294901760, %v597_v32 }
 0x122   : >> { %808 = vmatpush.xpose.msrb.mxu1 %v617_v40  ;;  %700 = vmatmul.f32.vlgmr.msra.gmra.mxu2 %v594_v22  ;;  %v2038_v40 = vand.u32 4294901760, %v1792_v38 }
 0x123   : >> { %1154 = vmatpush.xpose.msk.msrb.mxu2 %vm1526_vm3, %v1306_v63  ;;  %599 = vmatmul.f32.vlgmr.msra.gmra.mxu1 %v598_v36  ;;  %vm2041_vm3 = vnez %v2022_v41 }
 0x126   : >> { %812 = vmatpush.xpose.msrb.mxu1 %v623_v46 }
 0x127   : >> { %1155 = vmatpush.xpose.msk.msrb.mxu2 %vm1543_vm5, %v1306_v63 }
 0x12a   : >> { %816 = vmatpush.xpose.msrb.mxu1 %v629_v51 }
 0x12b   : >> { %1156 = vmatpush.xpose.msk.msrb.mxu2 %vm1554_vm6, %v1306_v63 }
 0x12e   : >> { %820 = vmatpush.xpose.msrb.mxu1 %v635_v56 }
 0x12f   : >> { %1157 = vmatpush.xpose.msk.msrb.mxu2 %vm1565_vm7, %v1306_v63 }
 0x132   : >> { %824 = vmatpush.xpose.msrb.mxu1 %v2033_v62 }
 0x133   : >> { %1158 = vmatpush.xpose.msk.msrb.mxu2 %vm1590_vm9, %v1306_v63 }
 0x136   : >> { %828 = vmatpush.xpose.msrb.mxu1 %v2034_v19 }
 0x137   : >> { %1159 = vmatpush.xpose.msk.msrb.mxu2 %vm1614_vm11, %v1306_v63 }
 0x13a   : >> { %832 = vmatpush.xpose.msrb.mxu1 %v2035_v23 }
 0x13b   : >> { %1160 = vmatpush.xpose.msk.msrb.mxu2 %vm1638_vm13, %v1306_v63 }
 0x13e   : >> { %836 = vmatpush.xpose.msrb.mxu1 %v2036_v31 }
 0x13f   : >> { %1161 = vmatpush.xpose.msk.msrb.mxu2 %vm1662_vm15, %v1306_v63 }
 0x142   : >> { %840 = vmatpush.xpose.msrb.mxu1 %v2037_v39 }
 0x143   : >> { %1162 = vmatpush.xpose.msk.msrb.mxu2 %vm1686_vm1, %v1306_v63 }
 0x146   : >> { %844 = vmatpush.xpose.msrb.mxu1 %v2038_v40 }
 0x147   : >> { %1163 = vmatpush.xpose.msk.msrb.mxu2 %vm2039_vm2, %v1306_v63 }
 0x14a   : >> { %848 = vmatpush.xpose.msrb.mxu1 %v2040_v42 }
 0x14b   : >> { %1164 = vmatpush.xpose.msk.msrb.mxu2 %vm2041_vm3, %v1306_v63 }
 0x14e   : >> { %852 = vmatpush.xpose.msrb.mxu1 %v683_v27 }
 0x14f   : >> { %1165 = vmatpush.xpose.msk.msrb.mxu2 %vm1758_vm0, %v1306_v63 }
 0x152   : >> { %856 = vmatpush.xpose.msrb.mxu1 %v689_v53 }
 0x153   : >> { %1166 = vmatpush.xpose.msk.msrb.mxu2 %vm1782_vm10, %v1306_v63 }
 0x156   : >> { %860 = vmatpush.xpose.msrb.mxu1 %v695_v25 }
 0x157   : >> { %1167 = vmatpush.xpose.msk.msrb.mxu2 %vm1806_vm4, %v1306_v63 }
 0x159   : >> { %862 = vmatmul.f32.vlgmr.msrb.gmra.mxu1 %v594_v22 }
 0x15b   : >> { %1168 = vmatpush.xpose.msk.msrb.mxu2 %vm1830_vm14, %v1306_v63 }
 0x15f   : >> { %1169 = vmatpush.xpose.msk.msrb.mxu2 %vm1854_vm8, %v1306_v63 }
 0x162   : >> { %899 = vmatmul.f32.vlgmr.msrb.gmra.mxu2 %v594_v22 }
 0x199   : >> { %v794_v30 = vpop.f32.mrf.mxu0 }
 0x19f   : >> { %v755_v50 = vpop.f32.mrf.mxu3 }
 0x1a0   : >> { %v600_v46 = vpop.f32.mrf.mxu1 }
 0x1a5   : >> { %v701_v45 = vpop.f32.mrf.mxu2 }
 0x1a6   : >> { %v702_v48 = vadd.f32 %v701_v45, %v600_v46 }
 0x1a8   : >> { %v756_v51 = vadd.f32 %v755_v50, %v702_v48 }
 0x1aa   : >> { %v795_v55 = vadd.f32 %v794_v30, %v756_v51 }
 0x1d6   : >> { %v863_v56 = vpop.f32.mrf.mxu1 }
 0x1d7   : >> { %v864_v58 = vadd.f32 %v863_v56, %v795_v55 }
 0x1e4   : > { %317 = sbr.rel (!%p315_p7) target bundleno = 27 (0x1b), region = 102 }
 0x1e5   : >> { %v900_v60 = vpop.f32.mrf.mxu2 }
 0x1e6   : >> { %v901_v27 = vadd.f32 %v900_v60, %v864_v58 }
 0x1e8   : >> { %904 = vst [vmem:[%s903_s13] sm:$0x7] %v901_v27 }
 0x1e9 PF: > { %s18_s18 = sadd.s32 1, %s1294_s18  }
 0x1ea   : > { %p15_p8 = scmp.ge.s32.totalorder %s18_s18, 4  }
 0x1ec   :  { %17 = sbr.rel (!%p15_p8) target bundleno = 2 (0x2), region = 113 }
 0x1f1   :  { %955 = vsyncpa [#allocation3], 1 }
 0x1f2   :  { %957 = vsyncpa [#allocation3 + $0x1], 1 }
 0x1f3   :  { %958 = vsyncpa [#allocation4], 1 }
 0x1f4   :  { %960 = vsyncpa [#allocation4 + $0x1], 1 }

</bundles_post_ra>
